<compile_context>
chip_gen: v6e
topology: v6e:2x2x1
jax: 0.10.0
libtpu: 0.0.40
codegen_flags: <defaults>
</compile_context>

<pallas_src>
import jax
import jax.numpy as jnp
from jax.experimental import pallas as pl
from jax.experimental.pallas import tpu as pltpu

INPUT_DIM = 32
HIDDEN_DIM = 64
OUTPUT_DIM = 2
BN_EPS = 1e-5


def _round_up(n, m):
    return ((n + m - 1) // m) * m


def metadata_mlp_kernel(x_ref,
                        w1_ref, b1_ref,
                        w2_ref, b2_ref,
                        w3_ref, b3_ref,
                        wo_ref, bo_ref,
                        out_ref):
    # BN already folded into the weights/biases; Dropout is identity in eval.
    h = x_ref[...].astype(jnp.bfloat16)

    def linear_swish(h_bf16, w_ref, b_ref):
        y = jnp.dot(h_bf16, w_ref[...],
                    preferred_element_type=jnp.float32) + b_ref[...]
        z = y * jax.nn.sigmoid(y)          # Swish in f32 (VPU + EUP)
        return z.astype(jnp.bfloat16)      # bf16 operands for the next MXU pass

    h = linear_swish(h, w1_ref, b1_ref)
    h = linear_swish(h, w2_ref, b2_ref)
    h = linear_swish(h, w3_ref, b3_ref)

    # Output layer (OUTPUT_DIM=2 equals the full last-dim extent, so the
    # (bt, 2) output block is legal; output bytes are tiny so masked stores
    # are not a bottleneck here).
    out = jnp.dot(h, wo_ref[...],
                  preferred_element_type=jnp.float32) + bo_ref[...]
    out_ref[...] = out.astype(out_ref.dtype)


def _fold_bn_into_linear(w, b, gamma, beta, mean, var):
    # (x@w + b - mean) * gamma/sqrt(var+eps) + beta
    #   == x @ (w * s) + ((b - mean) * s + beta)   with s = gamma/sqrt(var+eps)
    scale = gamma / jnp.sqrt(var + BN_EPS)
    w_f = w * scale[None, :]
    b_f = (b - mean) * scale + beta
    return w_f, b_f


def metadata_mlp(x, params, *, batch_tile=1024):
    (w1, b1, g1, be1, m1, v1,
     w2, b2, g2, be2, m2, v2,
     w3, b3, g3, be3, m3, v3,
     wo, bo) = params

    # One-time wrapper-side BN fold.
    w1f, b1f = _fold_bn_into_linear(w1, b1, g1, be1, m1, v1)
    w2f, b2f = _fold_bn_into_linear(w2, b2, g2, be2, m2, v2)
    w3f, b3f = _fold_bn_into_linear(w3, b3, g3, be3, m3, v3)

    # bf16 weights for the MXU; f32 biases as lane-last (1, D) arrays.
    weights = [w.astype(jnp.bfloat16) for w in (w1f, w2f, w3f, wo)]
    biases = [b.reshape(1, -1).astype(jnp.float32) for b in (b1f, b2f, b3f, bo)]

    B = x.shape[0]
    bt = min(batch_tile, _round_up(B, 8))   # tile is a multiple of 8 (sublanes)
    Bp = _round_up(B, bt)
    if Bp != B:
        x = jnp.pad(x, ((0, Bp - B), (0, 0)))

    const2d = lambda i: (0, 0)              # constant block -> no re-DMA per step
    in_specs = [pl.BlockSpec((bt, INPUT_DIM), lambda i: (i, 0))]
    args = [x]
    for w, b in zip(weights, biases):
        in_specs.append(pl.BlockSpec(w.shape, const2d))
        in_specs.append(pl.BlockSpec(b.shape, const2d))
        args.append(w)
        args.append(b)

    out = pl.pallas_call(
        metadata_mlp_kernel,
        out_shape=jax.ShapeDtypeStruct((Bp, OUTPUT_DIM), jnp.float32),
        grid_spec=pltpu.PrefetchScalarGridSpec(
            num_scalar_prefetch=0,
            grid=(Bp // bt,),
            in_specs=in_specs,
            out_specs=pl.BlockSpec((bt, OUTPUT_DIM), lambda i: (i, 0)),
        ),
        compiler_params=pltpu.CompilerParams(
            dimension_semantics=("parallel",),   # batch axis shards across TCs
        ),
    )(*args)
    return out[:B]


def init_params(key):
    """Deterministic synthetic parameters matching MetadataMLP's shapes."""
    ks = jax.random.split(key, 16)

    def lin(kw, kb, d_in, d_out):
        w = jax.random.normal(kw, (d_in, d_out), jnp.float32) * (1.0 / jnp.sqrt(d_in))
        b = jax.random.normal(kb, (d_out,), jnp.float32) * 0.01
        return w, b

    def bn(kg, kb, km, kv, d):
        gamma = 1.0 + 0.1 * jax.random.normal(kg, (d,), jnp.float32)
        beta = 0.1 * jax.random.normal(kb, (d,), jnp.float32)
        mean = 0.1 * jax.random.normal(km, (d,), jnp.float32)
        var = 0.5 + jax.random.uniform(kv, (d,), jnp.float32)  # strictly positive
        return gamma, beta, mean, var

    w1, b1 = lin(ks[0], ks[1], INPUT_DIM, HIDDEN_DIM)
    g1, be1, m1, v1 = bn(ks[2], ks[3], ks[4], ks[5], HIDDEN_DIM)
    w2, b2 = lin(ks[6], ks[7], HIDDEN_DIM, HIDDEN_DIM)
    g2, be2, m2, v2 = bn(ks[8], ks[9], ks[10], ks[11], HIDDEN_DIM)
    w3, b3 = lin(ks[12], ks[13], HIDDEN_DIM, HIDDEN_DIM)
    g3, be3, m3, v3 = bn(ks[14], ks[15], ks[0], ks[1], HIDDEN_DIM)
    wo, bo = lin(ks[2], ks[3], HIDDEN_DIM, OUTPUT_DIM)

    return (w1, b1, g1, be1, m1, v1,
            w2, b2, g2, be2, m2, v2,
            w3, b3, g3, be3, m3, v3,
            wo, bo)


def reference_forward(x, params):
    """Pure-JAX f32 reference (eval-mode PyTorch semantics) for validation."""
    (w1, b1, g1, be1, m1, v1,
     w2, b2, g2, be2, m2, v2,
     w3, b3, g3, be3, m3, v3,
     wo, bo) = params

    def block(h, w, b, g, be, m, v):
        y = h @ w + b
        z = (y - m) / jnp.sqrt(v + BN_EPS) * g + be
        return z * jax.nn.sigmoid(z)

    h = block(x, w1, b1, g1, be1, m1, v1)
    h = block(h, w2, b2, g2, be2, m2, v2)
    h = block(h, w3, b3, g3, be3, m3, v3)
    return h @ wo + bo


if __name__ == "__main__":
    key = jax.random.PRNGKey(0)
    kx, kp = jax.random.split(key)

    B = 64  # small test batch; single grid step (tile auto-shrinks to B)
    x = jax.random.normal(kx, (B, INPUT_DIM), jnp.float32)
    params = init_params(kp)

    out = metadata_mlp(x, params)
    out = jax.block_until_ready(out)

    ref = reference_forward(x, params)
    assert out.shape == (B, OUTPUT_DIM)
    # bf16 MXU operands with f32 accumulation -> relaxed tolerance vs f32 ref.
    assert jnp.allclose(out, ref, atol=5e-2, rtol=5e-2), (
        f"max abs err {jnp.max(jnp.abs(out - ref))}")

    print("KERNEL_OK")
</pallas_src>

<mosaic_0001>
module attributes {stable_mosaic.version = 11 : i64} {
  func.func @metadata_mlp_kernel(%arg0: i32, %arg1: memref<64x32xf32, #tpu.memory_space<vmem>>, %arg2: memref<32x64xbf16, #tpu.memory_space<vmem>>, %arg3: memref<1x64xf32, #tpu.memory_space<vmem>>, %arg4: memref<64x64xbf16, #tpu.memory_space<vmem>>, %arg5: memref<1x64xf32, #tpu.memory_space<vmem>>, %arg6: memref<64x64xbf16, #tpu.memory_space<vmem>>, %arg7: memref<1x64xf32, #tpu.memory_space<vmem>>, %arg8: memref<64x2xbf16, #tpu.memory_space<vmem>>, %arg9: memref<1x2xf32, #tpu.memory_space<vmem>>, %arg10: memref<64x2xf32, #tpu.memory_space<vmem>>) attributes {dimension_semantics = [#tpu.dimension_semantics<parallel>], iteration_bounds = array<i64: 1>, scalar_prefetch = 0 : i64, scratch_operands = 0 : i64, tpu.core_type = #tpu.core_type<tc>, window_params = [{transform_indices = @transform_0, window_bounds = array<i64: 64, 32>}, {pipeline_mode = #tpu.pipeline_mode<synchronous>, transform_indices = @transform_1, window_bounds = array<i64: 32, 64>}, {pipeline_mode = #tpu.pipeline_mode<synchronous>, transform_indices = @transform_2, window_bounds = array<i64: 1, 64>}, {pipeline_mode = #tpu.pipeline_mode<synchronous>, transform_indices = @transform_3, window_bounds = array<i64: 64, 64>}, {pipeline_mode = #tpu.pipeline_mode<synchronous>, transform_indices = @transform_4, window_bounds = array<i64: 1, 64>}, {pipeline_mode = #tpu.pipeline_mode<synchronous>, transform_indices = @transform_5, window_bounds = array<i64: 64, 64>}, {pipeline_mode = #tpu.pipeline_mode<synchronous>, transform_indices = @transform_6, window_bounds = array<i64: 1, 64>}, {pipeline_mode = #tpu.pipeline_mode<synchronous>, transform_indices = @transform_7, window_bounds = array<i64: 64, 2>}, {pipeline_mode = #tpu.pipeline_mode<synchronous>, transform_indices = @transform_8, window_bounds = array<i64: 1, 2>}, {transform_indices = @transform_9, window_bounds = array<i64: 64, 2>}]} {
    %c0 = arith.constant 0 : index
    %c0_0 = arith.constant 0 : index
    %0 = vector.load %arg1[%c0, %c0_0] : memref<64x32xf32, #tpu.memory_space<vmem>>, vector<64x32xf32>
    %1 = arith.truncf %0 : vector<64x32xf32> to vector<64x32xbf16>
    %c0_1 = arith.constant 0 : index
    %c0_2 = arith.constant 0 : index
    %2 = vector.load %arg2[%c0_1, %c0_2] : memref<32x64xbf16, #tpu.memory_space<vmem>>, vector<32x64xbf16>
    %cst = arith.constant dense<0.000000e+00> : vector<64x64xf32>
    %3 = tpu.matmul %1, %2, %cst {dimension_numbers = #tpu.dot_dimension_numbers<[1], [0], [0], [1], [0, 0, 1, 1], [], []>} : vector<64x32xbf16>, vector<32x64xbf16>, vector<64x64xf32> -> vector<64x64xf32>
    %c0_3 = arith.constant 0 : index
    %c0_4 = arith.constant 0 : index
    %4 = vector.load %arg3[%c0_3, %c0_4] : memref<1x64xf32, #tpu.memory_space<vmem>>, vector<1x64xf32>
    %5 = vector.broadcast %4 : vector<1x64xf32> to vector<64x64xf32>
    %6 = arith.addf %3, %5 : vector<64x64xf32>
    %7 = arith.negf %6 : vector<64x64xf32>
    %8 = math.exp %7 : vector<64x64xf32>
    %cst_5 = arith.constant 1.000000e+00 : f32
    %9 = vector.broadcast %cst_5 : f32 to vector<64x64xf32>
    %10 = arith.addf %9, %8 : vector<64x64xf32>
    %11 = arith.divf %9, %10 : vector<64x64xf32>
    %12 = arith.mulf %6, %11 : vector<64x64xf32>
    %13 = arith.truncf %12 : vector<64x64xf32> to vector<64x64xbf16>
    %c0_6 = arith.constant 0 : index
    %c0_7 = arith.constant 0 : index
    %14 = vector.load %arg4[%c0_6, %c0_7] : memref<64x64xbf16, #tpu.memory_space<vmem>>, vector<64x64xbf16>
    %cst_8 = arith.constant dense<0.000000e+00> : vector<64x64xf32>
    %15 = tpu.matmul %13, %14, %cst_8 {dimension_numbers = #tpu.dot_dimension_numbers<[1], [0], [0], [1], [0, 0, 1, 1], [], []>} : vector<64x64xbf16>, vector<64x64xbf16>, vector<64x64xf32> -> vector<64x64xf32>
    %c0_9 = arith.constant 0 : index
    %c0_10 = arith.constant 0 : index
    %16 = vector.load %arg5[%c0_9, %c0_10] : memref<1x64xf32, #tpu.memory_space<vmem>>, vector<1x64xf32>
    %17 = vector.broadcast %16 : vector<1x64xf32> to vector<64x64xf32>
    %18 = arith.addf %15, %17 : vector<64x64xf32>
    %19 = arith.negf %18 : vector<64x64xf32>
    %20 = math.exp %19 : vector<64x64xf32>
    %cst_11 = arith.constant 1.000000e+00 : f32
    %21 = vector.broadcast %cst_11 : f32 to vector<64x64xf32>
    %22 = arith.addf %21, %20 : vector<64x64xf32>
    %23 = arith.divf %21, %22 : vector<64x64xf32>
    %24 = arith.mulf %18, %23 : vector<64x64xf32>
    %25 = arith.truncf %24 : vector<64x64xf32> to vector<64x64xbf16>
    %c0_12 = arith.constant 0 : index
    %c0_13 = arith.constant 0 : index
    %26 = vector.load %arg6[%c0_12, %c0_13] : memref<64x64xbf16, #tpu.memory_space<vmem>>, vector<64x64xbf16>
    %cst_14 = arith.constant dense<0.000000e+00> : vector<64x64xf32>
    %27 = tpu.matmul %25, %26, %cst_14 {dimension_numbers = #tpu.dot_dimension_numbers<[1], [0], [0], [1], [0, 0, 1, 1], [], []>} : vector<64x64xbf16>, vector<64x64xbf16>, vector<64x64xf32> -> vector<64x64xf32>
    %c0_15 = arith.constant 0 : index
    %c0_16 = arith.constant 0 : index
    %28 = vector.load %arg7[%c0_15, %c0_16] : memref<1x64xf32, #tpu.memory_space<vmem>>, vector<1x64xf32>
    %29 = vector.broadcast %28 : vector<1x64xf32> to vector<64x64xf32>
    %30 = arith.addf %27, %29 : vector<64x64xf32>
    %31 = arith.negf %30 : vector<64x64xf32>
    %32 = math.exp %31 : vector<64x64xf32>
    %cst_17 = arith.constant 1.000000e+00 : f32
    %33 = vector.broadcast %cst_17 : f32 to vector<64x64xf32>
    %34 = arith.addf %33, %32 : vector<64x64xf32>
    %35 = arith.divf %33, %34 : vector<64x64xf32>
    %36 = arith.mulf %30, %35 : vector<64x64xf32>
    %37 = arith.truncf %36 : vector<64x64xf32> to vector<64x64xbf16>
    %c0_18 = arith.constant 0 : index
    %c0_19 = arith.constant 0 : index
    %38 = vector.load %arg8[%c0_18, %c0_19] : memref<64x2xbf16, #tpu.memory_space<vmem>>, vector<64x2xbf16>
    %cst_20 = arith.constant dense<0.000000e+00> : vector<64x2xf32>
    %39 = tpu.matmul %37, %38, %cst_20 {dimension_numbers = #tpu.dot_dimension_numbers<[1], [0], [0], [1], [0, 0, 1, 1], [], []>} : vector<64x64xbf16>, vector<64x2xbf16>, vector<64x2xf32> -> vector<64x2xf32>
    %c0_21 = arith.constant 0 : index
    %c0_22 = arith.constant 0 : index
    %40 = vector.load %arg9[%c0_21, %c0_22] : memref<1x2xf32, #tpu.memory_space<vmem>>, vector<1x2xf32>
    %41 = vector.broadcast %40 : vector<1x2xf32> to vector<64x2xf32>
    %42 = arith.addf %39, %41 : vector<64x2xf32>
    %c0_23 = arith.constant 0 : index
    %c0_24 = arith.constant 0 : index
    %43 = vector.load %arg10[%c0_23, %c0_24] : memref<64x2xf32, #tpu.memory_space<vmem>>, vector<64x2xf32>
    tpu.vector_store %arg10[%c0_23, %c0_24], %42 {strides = array<i32>} : memref<64x2xf32, #tpu.memory_space<vmem>>, vector<64x2xf32>,
    return
  }
  func.func @transform_0(%arg0: i32) -> (i32, i32) {
    %c0_i32 = arith.constant 0 : i32
    %c0_i32_0 = arith.constant 0 : i32
    return %arg0, %c0_i32 : i32, i32
  }
  func.func @transform_1(%arg0: i32) -> (i32, i32) {
    %c0_i32 = arith.constant 0 : i32
    %c0_i32_0 = arith.constant 0 : i32
    %c0_i32_1 = arith.constant 0 : i32
    return %c0_i32, %c0_i32_0 : i32, i32
  }
  func.func @transform_2(%arg0: i32) -> (i32, i32) {
    %c0_i32 = arith.constant 0 : i32
    %c0_i32_0 = arith.constant 0 : i32
    %c0_i32_1 = arith.constant 0 : i32
    return %c0_i32, %c0_i32_0 : i32, i32
  }
  func.func @transform_3(%arg0: i32) -> (i32, i32) {
    %c0_i32 = arith.constant 0 : i32
    %c0_i32_0 = arith.constant 0 : i32
    %c0_i32_1 = arith.constant 0 : i32
    return %c0_i32, %c0_i32_0 : i32, i32
  }
  func.func @transform_4(%arg0: i32) -> (i32, i32) {
    %c0_i32 = arith.constant 0 : i32
    %c0_i32_0 = arith.constant 0 : i32
    %c0_i32_1 = arith.constant 0 : i32
    return %c0_i32, %c0_i32_0 : i32, i32
  }
  func.func @transform_5(%arg0: i32) -> (i32, i32) {
    %c0_i32 = arith.constant 0 : i32
    %c0_i32_0 = arith.constant 0 : i32
    %c0_i32_1 = arith.constant 0 : i32
    return %c0_i32, %c0_i32_0 : i32, i32
  }
  func.func @transform_6(%arg0: i32) -> (i32, i32) {
    %c0_i32 = arith.constant 0 : i32
    %c0_i32_0 = arith.constant 0 : i32
    %c0_i32_1 = arith.constant 0 : i32
    return %c0_i32, %c0_i32_0 : i32, i32
  }
  func.func @transform_7(%arg0: i32) -> (i32, i32) {
    %c0_i32 = arith.constant 0 : i32
    %c0_i32_0 = arith.constant 0 : i32
    %c0_i32_1 = arith.constant 0 : i32
    return %c0_i32, %c0_i32_0 : i32, i32
  }
  func.func @transform_8(%arg0: i32) -> (i32, i32) {
    %c0_i32 = arith.constant 0 : i32
    %c0_i32_0 = arith.constant 0 : i32
    %c0_i32_1 = arith.constant 0 : i32
    return %c0_i32, %c0_i32_0 : i32, i32
  }
  func.func @transform_9(%arg0: i32) -> (i32, i32) {
    %c0_i32 = arith.constant 0 : i32
    %c0_i32_0 = arith.constant 0 : i32
    return %arg0, %c0_i32 : i32, i32
  }
}

</mosaic_0001>

<bundles_post_ra>
// kernel: tpu_custom_call.1
= control target key start
LH: loop header
LB: loop body
LE: loop exit
PB: predicated region body
PF: predicated region fallthrough
CT: control target
= control target key end

     0   :  { %vm68_vm0 = vcmask 261120   ;;  %vm245_vm1 = vcmask 523264   ;;  %vm675_vm2 = vcmask 15360   ;;  %s1122_s1 = inlined_call_operand.vmem [shape: bf16[32,64], index: 1, kind: input, shape index: {}]   ;;  %s1123_s0 = inlined_call_operand.vmem [shape: f32[64,32], index: 0, kind: input, shape index: {}]   ;;  %s1124_s3 = inlined_call_operand.vmem [shape: bf16[64,64], index: 3, kind: input, shape index: {}]   ;;  %s1125_s2 = inlined_call_operand.vmem [shape: f32[1,64], index: 2, kind: input, shape index: {}]   ;;  %s1126_s5 = inlined_call_operand.vmem [shape: bf16[64,64], index: 5, kind: input, shape index: {}]   ;;  %s1127_s4 = inlined_call_operand.vmem [shape: f32[1,64], index: 4, kind: input, shape index: {}]   ;;  %s1128_s7 = inlined_call_operand.vmem [shape: bf16[64,2], index: 7, kind: input, shape index: {}]   ;;  %s1129_s6 = inlined_call_operand.vmem [shape: f32[1,64], index: 6, kind: input, shape index: {}]   ;;  %s1130_s8 = inlined_call_operand.vmem [shape: f32[1,2], index: 8, kind: input, shape index: {}]   ;;  %s1131_s9 = inlined_call_operand.vmem [shape: f32[64,2], index: 9, kind: output, shape index: {}]  }
   0x1   :  { %v836_v0 = vld [vmem:[%s1122_s1 + $0x8] sm:$0xff]   ;;  %v837_v1 = vld [vmem:[%s1122_s1] sm:$0xff]   ;;  %v35_v5 = vld [vmem:[%s1123_s0 + $0x10] sm:$0xff] }
   0x2   :  { %776 = vmatprep.subr.bf16.mxu0 %v836_v0  ;;  %v33_v2 = vld [vmem:[%s1123_s0] sm:$0xff]  ;;  %v34_v3 = vld [vmem:[%s1123_s0 + $0x8] sm:$0xff]  ;;  %v36_v6 = vld [vmem:[%s1123_s0 + $0x18] sm:$0xff] }
   0x3   :  { %777 = vmatpush3.bf16.msra.mxu0 %v836_v0  ;;  %v41_v4 = vpack.c.bf16 %v34_v3, %v33_v2  ;;  %v37_v7 = vld [vmem:[%s1123_s0 + $0x20] sm:$0xff]  ;;  %v38_v8 = vld [vmem:[%s1123_s0 + $0x28] sm:$0xff]  ;;  %v42_v9 = vpack.c.bf16 %v36_v6, %v35_v5  ;;  %v39_v11 = vld [vmem:[%s1123_s0 + $0x30] sm:$0xff] }
   0x4   :  { %778 = vmatprep.subr.bf16.mxu0 %v837_v1  ;;  %v43_v10 = vpack.c.bf16 %v38_v8, %v37_v7  ;;  %v40_v12 = vld [vmem:[%s1123_s0 + $0x38] sm:$0xff]  ;;  %v839_v15 = vld [vmem:[%s1124_s3 + $0x10] sm:$0xff]   ;;  %v840_v16 = vld [vmem:[%s1124_s3 + $0x8] sm:$0xff]  }
   0x5   :  { %780 = vmatprep.mubr.msk.bf16.mxu0 %vm68_vm0, %v41_v4  ;;  %v44_v13 = vpack.c.bf16 %v40_v12, %v39_v11  ;;  %v838_v14 = vld [vmem:[%s1124_s3 + $0x18] sm:$0xff]   ;;  %v841_v17 = vld [vmem:[%s1124_s3] sm:$0xff]  }
   0x6   :  { %788 = vmatprep.subr.bf16.mxu1 %v838_v14  ;;  %v688_v18 = vld [vmem:[%s1125_s2] ss:$0 sm:$0xff] }
   0x7   :  { %779 = vmatpush3.bf16.msra.mxu0 %v837_v1  ;;  %789 = vmatpush3.bf16.msra.mxu1 %v838_v14 }
   0x8   :  { %790 = vmatprep.subr.bf16.mxu1 %v839_v15 }
   0xa   :  { %781 = vmatmul.mubr.msk.bf16.vlgmr.msra.gmra.mxu0 %vm68_vm0, %v42_v9 }
   0xb   :  { %784 = vmatprep.mubr.msk.bf16.mxu0 %vm68_vm0, %v43_v10  ;;  %791 = vmatpush3.bf16.msra.mxu1 %v839_v15  ;;  %v842_v15 = vld [vmem:[%s1126_s5 + $0x18] sm:$0xff]  }
   0xc   :  { %792 = vmatprep.subr.bf16.mxu1 %v840_v16  ;;  %804 = vmatprep.subr.bf16.mxu0 %v842_v15 }
   0xd   :  { %805 = vmatpush3.bf16.msra.mxu0 %v842_v15 }
   0xf   :  { %793 = vmatpush3.bf16.msra.mxu1 %v840_v16  ;;  %v843_v16 = vld [vmem:[%s1126_s5 + $0x10] sm:$0xff]  }
  0x10   :  { %794 = vmatprep.subr.bf16.mxu1 %v841_v17  ;;  %806 = vmatprep.subr.bf16.mxu0 %v843_v16 }
  0x11   :  { %807 = vmatpush3.bf16.msra.mxu0 %v843_v16  ;;  %v846_v16 = vld [vmem:[%s1128_s7 + $0x18] sm:$0xff]  }
  0x12   :  { %785 = vmatmul.mubr.msk.bf16.gmra.mxu0 %vm68_vm0, %v44_v13 }
  0x13   :  { %795 = vmatpush3.bf16.msra.mxu1 %v841_v17  ;;  %v844_v17 = vld [vmem:[%s1126_s5 + $0x8] sm:$0xff]  }
  0x14   :  { %808 = vmatprep.subr.bf16.mxu0 %v844_v17  ;;  %820 = vmatprep.subr.bf16.mxu1 %v846_v16 }
  0x15   :  { %809 = vmatpush3.bf16.msra.mxu0 %v844_v17  ;;  %v847_v17 = vld [vmem:[%s1128_s7 + $0x10] sm:$0xff]  }
  0xca   :  { %v782_v19 = vpop.f32.mrf.mxu0 }
  0xcb   :  { %v124_v20 = vadd.f32 %v782_v19, %v688_v18  ;;  %v703_v19 = vld [vmem:[%s1127_s4] ss:$0 sm:$0xff] }
  0xcc   :  { %v115_v21 = vpop.f32.mrf.mxu0 }
  0xcd   :  { %v697_v22 = vmul.f32 -1.442695, %v124_v20  ;;  %v116_v23 = vadd.f32 %v688_v18, %v115_v21 }
  0xce   :  { %v783_v24 = vpop.f32.mrf.mxu0 }
  0xcf   :  { %v695_v25 = vmul.f32 -1.442695, %v116_v23  ;;  %v127_v26 = vadd.f32 %v783_v24, %v688_v18  ;;  %850 = vpow2.f32 %v697_v22 }
  0xd0   :  { %v118_v27 = vpop.f32.mrf.mxu0 }
  0xd1   :  { %852 = vpow2.f32 %v695_v25  ;;  %v698_v28 = vmul.f32 -1.442695, %v127_v26  ;;  %v119_v29 = vadd.f32 %v688_v18, %v118_v27 }
  0xd2   :  { %v786_v30 = vpop.f32.mrf.mxu0 }
  0xd3   :  { %854 = vpow2.f32 %v698_v28  ;;  %v696_v31 = vmul.f32 -1.442695, %v119_v29  ;;  %v140_v32 = vadd.f32 %v786_v30, %v688_v18 }
  0xd4   :  { %v131_v33 = vpop.f32.mrf.mxu0 }
  0xd5   :  { %856 = vpow2.f32 %v696_v31  ;;  %v701_v34 = vmul.f32 -1.442695, %v140_v32  ;;  %v132_v35 = vadd.f32 %v688_v18, %v131_v33 }
  0xd6   :  { %v787_v36 = vpop.f32.mrf.mxu0 }
  0xd7   :  { %v699_v37 = vmul.f32 -1.442695, %v132_v35  ;;  %v143_v38 = vadd.f32 %v787_v36, %v688_v18  ;;  %858 = vpow2.f32 %v701_v34 }
  0xd8   :  { %v134_v39 = vpop.f32.mrf.mxu0 }
  0xd9   :  { %860 = vpow2.f32 %v699_v37  ;;  %v702_v40 = vmul.f32 -1.442695, %v143_v38  ;;  %v135_v41 = vadd.f32 %v688_v18, %v134_v39  ;;  %v845_v18 = vld [vmem:[%s1126_s5] sm:$0xff]  }
  0xda   :  { %810 = vmatprep.subr.bf16.mxu0 %v845_v18 }
  0xdb   :  { %862 = vpow2.f32 %v702_v40  ;;  %v700_v42 = vmul.f32 -1.442695, %v135_v41  ;;  %811 = vmatpush3.bf16.msra.mxu0 %v845_v18  ;;  %v848_v18 = vld [vmem:[%s1128_s7 + $0x8] sm:$0xff]  }
  0xdc   :  { %v851_v43 = vpop.eup %850 }
  0xdd   :  { %864 = vpow2.f32 %v700_v42  ;;  %v172_v47 = vadd.f32 1.0, %v851_v43 }
  0xde   :  { %v853_v44 = vpop.eup %852 }
  0xdf   :  { %v170_v45 = vadd.f32 1.0, %v853_v44 }
  0xe0   :  { %v855_v46 = vpop.eup %854 }
  0xe1   :  { %v173_v48 = vadd.f32 1.0, %v855_v46  ;;  %866 = vrcp.f32 %v170_v45 }
  0xe2   :  { %v857_v49 = vpop.eup %856 }
  0xe3   :  { %868 = vrcp.f32 %v173_v48  ;;  %v171_v50 = vadd.f32 1.0, %v857_v49 }
  0xe4   :  { %870 = vrcp.f32 %v172_v47  ;;  %v859_v51 = vpop.eup %858 }
  0xe5   :  { %872 = vrcp.f32 %v171_v50  ;;  %v176_v55 = vadd.f32 1.0, %v859_v51 }
  0xe6   :  { %v861_v52 = vpop.eup %860 }
  0xe7   :  { %v174_v53 = vadd.f32 1.0, %v861_v52 }
  0xe8   :  { %v863_v54 = vpop.eup %862 }
  0xe9   :  { %v177_v56 = vadd.f32 1.0, %v863_v54  ;;  %874 = vrcp.f32 %v174_v53 }
  0xea   :  { %v865_v57 = vpop.eup %864 }
  0xeb   :  { %876 = vrcp.f32 %v177_v56  ;;  %v175_v58 = vadd.f32 1.0, %v865_v57 }
  0xec   :  { %878 = vrcp.f32 %v176_v55 }
  0xed   :  { %880 = vrcp.f32 %v175_v58 }
  0xee   :  { %v867_v59 = vpop.eup %866 }
  0xef   :  { %v194_v0 = vmul.f32 %v867_v59, %v116_v23 }
  0xf0   :  { %v869_v60 = vpop.eup %868 }
  0xf1   :  { %v871_v61 = vpop.eup %870  ;;  %v197_v63 = vmul.f32 %v869_v60, %v127_v26 }
  0xf2   :  { %v873_v62 = vpop.eup %872  ;;  %v196_v2 = vmul.f32 %v871_v61, %v124_v20 }
  0xf3   :  { %v195_v1 = vmul.f32 %v873_v62, %v119_v29 }
  0xf4   :  { %v203_v4 = vpack.c.bf16 %v197_v63, %v196_v2 }
  0xf5   :  { %v202_v3 = vpack.c.bf16 %v195_v1, %v194_v0 }
  0xf6   :  { %v875_v5 = vpop.eup %874 }
  0xf7   :  { %796 = vmatprep.mubr.msk.bf16.mxu1 %vm245_vm1, %v202_v3  ;;  %v198_v10 = vmul.f32 %v875_v5, %v132_v35 }
  0xf8   :  { %v877_v6 = vpop.eup %876  ;;  %797 = vmatmul.mubr.msk.bf16.vlgmr.msra.gmra.mxu1 %vm245_vm1, %v203_v4 }
  0xf9   :  { %v879_v7 = vpop.eup %878  ;;  %v201_v9 = vmul.f32 %v877_v6, %v143_v38  ;;  %821 = vmatpush3.bf16.msra.mxu1 %v846_v16 }
  0xfa   :  { %v881_v8 = vpop.eup %880  ;;  %v200_v12 = vmul.f32 %v879_v7, %v140_v32  ;;  %822 = vmatprep.subr.bf16.mxu1 %v847_v17 }
  0xfb   :  { %v199_v11 = vmul.f32 %v881_v8, %v135_v41 }
  0xfc   :  { %v205_v14 = vpack.c.bf16 %v201_v9, %v200_v12 }
  0xfd   :  { %v204_v13 = vpack.c.bf16 %v199_v11, %v198_v10  ;;  %823 = vmatpush3.bf16.msra.mxu1 %v847_v17  ;;  %v737_v17 = vld [vmem:[%s1130_s8] ss:$0 sm:$0xff] }
  0xfe   :  { %824 = vmatprep.subr.bf16.mxu1 %v848_v18 }
  0xff   :  { %800 = vmatprep.mubr.msk.bf16.mxu1 %vm245_vm1, %v204_v13 }
 0x100   :  { %801 = vmatmul.mubr.msk.bf16.gmra.mxu1 %vm245_vm1, %v205_v14 }
 0x101   :  { %825 = vmatpush3.bf16.msra.mxu1 %v848_v18 }
 0x1b8   :  { %v798_v20 = vpop.f32.mrf.mxu1 }
 0x1b9   :  { %v301_v21 = vadd.f32 %v798_v20, %v703_v19  ;;  %v720_v20 = vld [vmem:[%s1129_s6] ss:$0 sm:$0xff] }
 0x1ba   :  { %v292_v22 = vpop.f32.mrf.mxu1 }
 0x1bb   :  { %v714_v23 = vmul.f32 -1.442695, %v301_v21  ;;  %v293_v24 = vadd.f32 %v703_v19, %v292_v22 }
 0x1bc   :  { %v799_v25 = vpop.f32.mrf.mxu1 }
 0x1bd   :  { %v712_v26 = vmul.f32 -1.442695, %v293_v24  ;;  %v304_v27 = vadd.f32 %v799_v25, %v703_v19  ;;  %882 = vpow2.f32 %v714_v23 }
 0x1be   :  { %v295_v28 = vpop.f32.mrf.mxu1 }
 0x1bf   :  { %884 = vpow2.f32 %v712_v26  ;;  %v715_v29 = vmul.f32 -1.442695, %v304_v27  ;;  %v296_v30 = vadd.f32 %v703_v19, %v295_v28 }
 0x1c0   :  { %v802_v31 = vpop.f32.mrf.mxu1 }
 0x1c1   :  { %886 = vpow2.f32 %v715_v29  ;;  %v713_v32 = vmul.f32 -1.442695, %v296_v30  ;;  %v317_v33 = vadd.f32 %v802_v31, %v703_v19 }
 0x1c2   :  { %v308_v34 = vpop.f32.mrf.mxu1 }
 0x1c3   :  { %888 = vpow2.f32 %v713_v32  ;;  %v718_v35 = vmul.f32 -1.442695, %v317_v33  ;;  %v309_v36 = vadd.f32 %v703_v19, %v308_v34 }
 0x1c4   :  { %v803_v37 = vpop.f32.mrf.mxu1 }
 0x1c5   :  { %v716_v38 = vmul.f32 -1.442695, %v309_v36  ;;  %v320_v39 = vadd.f32 %v803_v37, %v703_v19  ;;  %890 = vpow2.f32 %v718_v35 }
 0x1c6   :  { %v311_v40 = vpop.f32.mrf.mxu1 }
 0x1c7   :  { %892 = vpow2.f32 %v716_v38  ;;  %v719_v41 = vmul.f32 -1.442695, %v320_v39  ;;  %v312_v42 = vadd.f32 %v703_v19, %v311_v40  ;;  %v849_v19 = vld [vmem:[%s1128_s7] sm:$0xff]  }
 0x1c8   :  { %826 = vmatprep.subr.bf16.mxu1 %v849_v19 }
 0x1c9   :  { %894 = vpow2.f32 %v719_v41  ;;  %v717_v43 = vmul.f32 -1.442695, %v312_v42  ;;  %827 = vmatpush3.bf16.msra.mxu1 %v849_v19 }
 0x1ca   :  { %v883_v44 = vpop.eup %882 }
 0x1cb   :  { %896 = vpow2.f32 %v717_v43  ;;  %v349_v48 = vadd.f32 1.0, %v883_v44 }
 0x1cc   :  { %v885_v45 = vpop.eup %884 }
 0x1cd   :  { %v347_v46 = vadd.f32 1.0, %v885_v45 }
 0x1ce   :  { %v887_v47 = vpop.eup %886 }
 0x1cf   :  { %v350_v49 = vadd.f32 1.0, %v887_v47  ;;  %898 = vrcp.f32 %v347_v46 }
 0x1d0   :  { %v889_v50 = vpop.eup %888 }
 0x1d1   :  { %900 = vrcp.f32 %v350_v49  ;;  %v348_v51 = vadd.f32 1.0, %v889_v50 }
 0x1d2   :  { %902 = vrcp.f32 %v349_v48  ;;  %v891_v52 = vpop.eup %890 }
 0x1d3   :  { %904 = vrcp.f32 %v348_v51  ;;  %v353_v56 = vadd.f32 1.0, %v891_v52 }
 0x1d4   :  { %v893_v53 = vpop.eup %892 }
 0x1d5   :  { %v351_v54 = vadd.f32 1.0, %v893_v53 }
 0x1d6   :  { %v895_v55 = vpop.eup %894 }
 0x1d7   :  { %v354_v57 = vadd.f32 1.0, %v895_v55  ;;  %906 = vrcp.f32 %v351_v54 }
 0x1d8   :  { %v897_v58 = vpop.eup %896 }
 0x1d9   :  { %908 = vrcp.f32 %v354_v57  ;;  %v352_v59 = vadd.f32 1.0, %v897_v58 }
 0x1da   :  { %910 = vrcp.f32 %v353_v56 }
 0x1db   :  { %912 = vrcp.f32 %v352_v59 }
 0x1dc   :  { %v899_v60 = vpop.eup %898 }
 0x1dd   :  { %v371_v1 = vmul.f32 %v899_v60, %v293_v24 }
 0x1de   :  { %v901_v61 = vpop.eup %900 }
 0x1df   :  { %v903_v62 = vpop.eup %902  ;;  %v374_v0 = vmul.f32 %v901_v61, %v304_v27 }
 0x1e0   :  { %v905_v63 = vpop.eup %904  ;;  %v373_v3 = vmul.f32 %v903_v62, %v301_v21 }
 0x1e1   :  { %v372_v2 = vmul.f32 %v905_v63, %v296_v30 }
 0x1e2   :  { %v380_v5 = vpack.c.bf16 %v374_v0, %v373_v3 }
 0x1e3   :  { %v379_v4 = vpack.c.bf16 %v372_v2, %v371_v1 }
 0x1e4   :  { %v907_v6 = vpop.eup %906 }
 0x1e5   :  { %812 = vmatprep.mubr.msk.bf16.mxu0 %vm245_vm1, %v379_v4  ;;  %v375_v11 = vmul.f32 %v907_v6, %v309_v36 }
 0x1e6   :  { %v909_v7 = vpop.eup %908  ;;  %813 = vmatmul.mubr.msk.bf16.vlgmr.msra.gmra.mxu0 %vm245_vm1, %v380_v5 }
 0x1e7   :  { %v911_v8 = vpop.eup %910  ;;  %v378_v10 = vmul.f32 %v909_v7, %v320_v39 }
 0x1e8   :  { %v913_v9 = vpop.eup %912  ;;  %v377_v13 = vmul.f32 %v911_v8, %v317_v33 }
 0x1e9   :  { %v376_v12 = vmul.f32 %v913_v9, %v312_v42 }
 0x1ea   :  { %v382_v15 = vpack.c.bf16 %v378_v10, %v377_v13 }
 0x1eb   :  { %v381_v14 = vpack.c.bf16 %v376_v12, %v375_v11 }
 0x1ed   :  { %816 = vmatprep.mubr.msk.bf16.mxu0 %vm245_vm1, %v381_v14 }
 0x1ee   :  { %817 = vmatmul.mubr.msk.bf16.gmra.mxu0 %vm245_vm1, %v382_v15 }
 0x2a6   :  { %v814_v21 = vpop.f32.mrf.mxu0 }
 0x2a7   :  { %v477_v22 = vadd.f32 %v814_v21, %v720_v20 }
 0x2a8   :  { %v468_v23 = vpop.f32.mrf.mxu0 }
 0x2a9   :  { %v731_v24 = vmul.f32 -1.442695, %v477_v22  ;;  %v469_v25 = vadd.f32 %v720_v20, %v468_v23 }
 0x2aa   :  { %v815_v26 = vpop.f32.mrf.mxu0 }
 0x2ab   :  { %v729_v27 = vmul.f32 -1.442695, %v469_v25  ;;  %v480_v28 = vadd.f32 %v815_v26, %v720_v20  ;;  %914 = vpow2.f32 %v731_v24 }
 0x2ac   :  { %v471_v29 = vpop.f32.mrf.mxu0 }
 0x2ad   :  { %916 = vpow2.f32 %v729_v27  ;;  %v732_v30 = vmul.f32 -1.442695, %v480_v28  ;;  %v472_v31 = vadd.f32 %v720_v20, %v471_v29 }
 0x2ae   :  { %v818_v32 = vpop.f32.mrf.mxu0 }
 0x2af   :  { %918 = vpow2.f32 %v732_v30  ;;  %v730_v33 = vmul.f32 -1.442695, %v472_v31  ;;  %v493_v34 = vadd.f32 %v818_v32, %v720_v20 }
 0x2b0   :  { %v484_v35 = vpop.f32.mrf.mxu0 }
 0x2b1   :  { %920 = vpow2.f32 %v730_v33  ;;  %v735_v36 = vmul.f32 -1.442695, %v493_v34  ;;  %v485_v37 = vadd.f32 %v720_v20, %v484_v35 }
 0x2b2   :  { %v819_v38 = vpop.f32.mrf.mxu0 }
 0x2b3   :  { %v733_v39 = vmul.f32 -1.442695, %v485_v37  ;;  %v496_v40 = vadd.f32 %v819_v38, %v720_v20  ;;  %922 = vpow2.f32 %v735_v36 }
 0x2b4   :  { %v487_v41 = vpop.f32.mrf.mxu0 }
 0x2b5   :  { %924 = vpow2.f32 %v733_v39  ;;  %v736_v42 = vmul.f32 -1.442695, %v496_v40  ;;  %v488_v43 = vadd.f32 %v720_v20, %v487_v41 }
 0x2b7   :  { %926 = vpow2.f32 %v736_v42  ;;  %v734_v44 = vmul.f32 -1.442695, %v488_v43 }
 0x2b8   :  { %v915_v45 = vpop.eup %914 }
 0x2b9   :  { %928 = vpow2.f32 %v734_v44  ;;  %v525_v49 = vadd.f32 1.0, %v915_v45 }
 0x2ba   :  { %v917_v46 = vpop.eup %916 }
 0x2bb   :  { %v523_v47 = vadd.f32 1.0, %v917_v46 }
 0x2bc   :  { %v919_v48 = vpop.eup %918 }
 0x2bd   :  { %v526_v50 = vadd.f32 1.0, %v919_v48  ;;  %930 = vrcp.f32 %v523_v47 }
 0x2be   :  { %v921_v51 = vpop.eup %920 }
 0x2bf   :  { %932 = vrcp.f32 %v526_v50  ;;  %v524_v52 = vadd.f32 1.0, %v921_v51 }
 0x2c0   :  { %934 = vrcp.f32 %v525_v49  ;;  %v923_v53 = vpop.eup %922 }
 0x2c1   :  { %936 = vrcp.f32 %v524_v52  ;;  %v529_v57 = vadd.f32 1.0, %v923_v53 }
 0x2c2   :  { %v925_v54 = vpop.eup %924 }
 0x2c3   :  { %v527_v55 = vadd.f32 1.0, %v925_v54 }
 0x2c4   :  { %v927_v56 = vpop.eup %926 }
 0x2c5   :  { %v530_v58 = vadd.f32 1.0, %v927_v56  ;;  %938 = vrcp.f32 %v527_v55 }
 0x2c6   :  { %v929_v59 = vpop.eup %928 }
 0x2c7   :  { %940 = vrcp.f32 %v530_v58  ;;  %v528_v60 = vadd.f32 1.0, %v929_v59 }
 0x2c8   :  { %942 = vrcp.f32 %v529_v57 }
 0x2c9   :  { %944 = vrcp.f32 %v528_v60 }
 0x2ca   :  { %v931_v61 = vpop.eup %930 }
 0x2cb   :  { %v547_v2 = vmul.f32 %v931_v61, %v469_v25 }
 0x2cc   :  { %v933_v62 = vpop.eup %932 }
 0x2cd   :  { %v935_v63 = vpop.eup %934  ;;  %v550_v1 = vmul.f32 %v933_v62, %v480_v28 }
 0x2ce   :  { %v937_v0 = vpop.eup %936  ;;  %v549_v4 = vmul.f32 %v935_v63, %v477_v22 }
 0x2cf   :  { %v548_v3 = vmul.f32 %v937_v0, %v472_v31 }
 0x2d0   :  { %v556_v6 = vpack.c.bf16 %v550_v1, %v549_v4 }
 0x2d1   :  { %v555_v5 = vpack.c.bf16 %v548_v3, %v547_v2 }
 0x2d2   :  { %v939_v7 = vpop.eup %938 }
 0x2d3   :  { %828 = vmatprep.mubr.msk.bf16.mxu1 %vm245_vm1, %v555_v5  ;;  %v551_v12 = vmul.f32 %v939_v7, %v485_v37 }
 0x2d4   :  { %v941_v8 = vpop.eup %940  ;;  %829 = vmatmul.mubr.msk.bf16.vlgmr.msra.gmra.mxu1 %vm245_vm1, %v556_v6 }
 0x2d5   :  { %v943_v9 = vpop.eup %942  ;;  %v554_v11 = vmul.f32 %v941_v8, %v496_v40 }
 0x2d6   :  { %v945_v10 = vpop.eup %944  ;;  %v553_v14 = vmul.f32 %v943_v9, %v493_v34 }
 0x2d7   :  { %v552_v13 = vmul.f32 %v945_v10, %v488_v43 }
 0x2d8   :  { %v558_v16 = vpack.c.bf16 %v554_v11, %v553_v14 }
 0x2d9   :  { %v557_v15 = vpack.c.bf16 %v552_v13, %v551_v12 }
 0x2db   :  { %832 = vmatprep.mubr.msk.bf16.mxu1 %vm245_vm1, %v557_v15 }
 0x2dc   :  { %833 = vmatmul.mubr.msk.bf16.gmra.mxu1 %vm245_vm1, %v558_v16 }
 0x394   :  { %v830_v18 = vpop.f32.mrf.mxu1 }
 0x395   :  { %v653_v19 = vadd.f32 %v830_v18, %v737_v17 }
 0x396   :  { %v644_v20 = vpop.f32.mrf.mxu1 }
 0x397   :  { %678 = vst.msk [vmem:[%s1131_s9 + $0x10] sm:$0xff] %vm675_vm2, %v653_v19  ;;  %v645_v21 = vadd.f32 %v737_v17, %v644_v20 }
 0x398   :  { %v831_v22 = vpop.f32.mrf.mxu1 }
 0x399   :  { %676 = vst.msk [vmem:[%s1131_s9] sm:$0xff] %vm675_vm2, %v645_v21  ;;  %v656_v23 = vadd.f32 %v831_v22, %v737_v17 }
 0x39a   :  { %v647_v24 = vpop.f32.mrf.mxu1 }
 0x39b   :  { %679 = vst.msk [vmem:[%s1131_s9 + $0x18] sm:$0xff] %vm675_vm2, %v656_v23  ;;  %v648_v25 = vadd.f32 %v737_v17, %v647_v24 }
 0x39c   :  { %v834_v26 = vpop.f32.mrf.mxu1 }
 0x39d   :  { %677 = vst.msk [vmem:[%s1131_s9 + $0x8] sm:$0xff] %vm675_vm2, %v648_v25  ;;  %v669_v27 = vadd.f32 %v834_v26, %v737_v17 }
 0x39e   :  { %v660_v28 = vpop.f32.mrf.mxu1 }
 0x39f   :  { %682 = vst.msk [vmem:[%s1131_s9 + $0x30] sm:$0xff] %vm675_vm2, %v669_v27  ;;  %v661_v29 = vadd.f32 %v737_v17, %v660_v28 }
 0x3a0   :  { %v835_v30 = vpop.f32.mrf.mxu1 }
 0x3a1   :  { %680 = vst.msk [vmem:[%s1131_s9 + $0x20] sm:$0xff] %vm675_vm2, %v661_v29  ;;  %v672_v31 = vadd.f32 %v835_v30, %v737_v17 }
 0x3a2   :  { %v663_v32 = vpop.f32.mrf.mxu1 }
 0x3a3   :  { %683 = vst.msk [vmem:[%s1131_s9 + $0x38] sm:$0xff] %vm675_vm2, %v672_v31  ;;  %v664_v33 = vadd.f32 %v737_v17, %v663_v32 }
 0x3a5   :  { %681 = vst.msk [vmem:[%s1131_s9 + $0x28] sm:$0xff] %vm675_vm2, %v664_v33 }

</bundles_post_ra>
